<compile_context>
chip_gen: v7x
topology: tpu7x:2x2x1
jax: 0.10.0
libtpu: 0.0.40
codegen_flags: <defaults>
</compile_context>

<pallas_src>
import functools

import jax
import jax.numpy as jnp
from jax import lax
from jax.experimental import pallas as pl
from jax.experimental.pallas import tpu as pltpu


# --------------------------------------------------------------------------------------
# Kernel
# --------------------------------------------------------------------------------------
def _temporal_cnn_expert_kernel(x_ref, w1_ref, b1_ref, w2_ref, b2_ref,
                                aw_ref, ab_ref, fw_ref, fb_ref,
                                logits_ref, pooled_ref, *, T, T_pad, BB):
    """One grid step processes BB batch elements, flattened to M = BB*T_pad rows."""
    M = BB * T_pad
    H2 = w2_ref.shape[2]

    x = x_ref[0]                                            # (M, Cin) -- flattened in wrapper

    # Per-batch boundary masks, built once and reused by both convs.  After flattening,
    # sublane rolls wrap across batch boundaries, so the "previous" tap of each batch's
    # t==0 row and the "next" tap of each batch's t==T-1 row must be zeroed (this also
    # implements Conv1d's zero padding).  Rows with t in [T, T_pad) are time padding;
    # their conv outputs are garbage but never feed a valid row and are masked out of
    # the attention softmax below.
    t_idx = lax.broadcasted_iota(jnp.int32, (M, 1), 0) % T_pad
    prev_mask = t_idx == 0
    next_mask = t_idx == (T - 1)

    def conv1d_k3_relu(h, w_ref, b_ref):
        # Conv1d(k=3, pad=1) as three accumulating MXU dots (tap-wise, no lane-misaligned
        # concat, no (M,3C) intermediate).  w_ref is tap-major: (3, Cin, Cout).
        h_prev = jnp.where(prev_mask, 0.0, pltpu.roll(h, shift=1, axis=0))       # h[t-1]
        h_next = jnp.where(next_mask, 0.0, pltpu.roll(h, shift=M - 1, axis=0))   # h[t+1]
        wd = w_ref.dtype                                    # bf16 on v6e/v7x, f32 on v5e
        y = jnp.dot(h.astype(wd), w_ref[1], preferred_element_type=jnp.float32)
        y = y + jnp.dot(h_prev.astype(wd), w_ref[0], preferred_element_type=jnp.float32)
        y = y + jnp.dot(h_next.astype(wd), w_ref[2], preferred_element_type=jnp.float32)
        return jnp.maximum(y + b_ref[...], 0.0)

    h1 = conv1d_k3_relu(x, w1_ref, b1_ref)                  # (M, 64)
    # TODO(synk): nn.Dropout is identity in eval mode; stochastic training dropout not modeled.
    h2 = conv1d_k3_relu(h1, w2_ref, b2_ref)                 # (M, 128)

    # Temporal attention.  T_pad % 8 == 0 so this reshape only re-labels the sublane-major
    # axis (no VMEM relayout).  Scores/softmax kept 2-D (BB, T_pad) for dense vregs.
    h2_3d = h2.reshape(BB, T_pad, H2)                                            # (BB, T_pad, 128)
    scores = jnp.sum(h2_3d * aw_ref[...], axis=-1) + ab_ref[...]                 # (BB, T_pad)
    if T_pad != T:
        col = lax.broadcasted_iota(jnp.int32, (BB, T_pad), 1)
        scores = jnp.where(col < T, scores, -1e30)          # mask padded time steps
    scores = scores - jnp.max(scores, axis=-1, keepdims=True)
    e = jnp.exp(scores)
    denom = jnp.sum(e, axis=-1, keepdims=True)                                   # (BB, 1)
    attn = e * pl.reciprocal(denom, approx=True)                                 # (BB, T_pad)
    pooled = jnp.sum(h2_3d * attn[:, :, None], axis=1)                           # (BB, 128)

    pooled_ref[0] = pooled
    # fw/fb are zero-padded to 128 output lanes in the wrapper -> unmasked lane-dense store.
    logits_ref[0] = (jnp.dot(pooled, fw_ref[...], preferred_element_type=jnp.float32)
                     + fb_ref[...])


# --------------------------------------------------------------------------------------
# Hardware introspection (best-effort, with safe fallbacks)
# --------------------------------------------------------------------------------------
def _tpu_info():
    try:
        return pltpu.get_tpu_info()
    except Exception:
        return None


def _vmem_capacity_bytes():
    info = _tpu_info()
    if info is not None:
        for name in ("vmem_capacity_bytes", "vmem_bytes", "vmem_capacity"):
            v = getattr(info, name, None)
            if isinstance(v, int) and v > 0:
                return v
    return 128 << 20  # v5e/v6e default


def _num_tensorcores_per_chip():
    info = _tpu_info()
    if info is not None:
        for name in ("num_cores", "num_tensorcores", "tensor_cores_per_chip", "cores_per_chip"):
            v = getattr(info, name, None)
            if isinstance(v, int) and v > 0:
                return v
    try:
        if "v7" in jax.devices()[0].device_kind.lower():
            return 2
    except Exception:
        pass
    return 1


# --------------------------------------------------------------------------------------
# Block sizing
# --------------------------------------------------------------------------------------
def _pick_block_b(B, T_pad, n_cores, vmem_budget_bytes, target_rows=2048):
    """Batches per grid step: large M = BB*T_pad (amortize ~0.35us step overhead and fill
    the MXU), honest VMEM estimate with (8,128) lane padding, and a multi-step grid only
    when a second TensorCore exists to use it."""
    lane_bytes = 128 * 4                       # every channel dim pads to 128 f32 lanes
    live_slabs = 10                            # x + 2 taps, h1 + 2 taps, h2, casts, slack
    bytes_per_row = lane_bytes * (2 + live_slabs)   # "+2": double-buffered streamed x tile
    fixed = 2 << 20                            # weights (double-buffered), out slabs, misc
    usable = max(vmem_budget_bytes - fixed, 1 << 20)
    max_rows = max(T_pad, usable // bytes_per_row)
    rows = min(target_rows, max_rows)
    bb = max(1, min(B, rows // T_pad))
    # Force >= 2 grid steps only on multi-TensorCore parts (v7x) so
    # dimension_semantics=("parallel",) can shard steps across cores -- and only when the
    # split keeps per-step work above the ~512-row step-overhead floor.
    if n_cores > 1 and bb >= B and B > 1:
        bb_split = pl.cdiv(B, n_cores)
        if bb_split * T_pad >= 512:
            bb = bb_split
    return bb


# --------------------------------------------------------------------------------------
# Wrapper
# --------------------------------------------------------------------------------------
def convert_torch_conv1d_weight(w_oik):
    """PyTorch Conv1d weight (Cout, Cin, K) -> tap-major (K, Cin, Cout) used by this kernel."""
    return jnp.transpose(jnp.asarray(w_oik), (2, 1, 0))


def temporal_cnn_expert(x, params, *, block_b=None, matmul_dtype=jnp.float32):
    """x: (B, T, Cin) float32.  params conv weights are tap-major (3, Cin, Cout)
    (use convert_torch_conv1d_weight for real PyTorch (Cout, Cin, 3) weights).
    Returns (logits (B, num_classes), pooled (B, 128))."""
    w1, b1, w2, b2, aw, ab, fw, fb = params
    B, T, Cin = x.shape
    H1, H2 = w1.shape[2], w2.shape[2]
    NC = fw.shape[1]

    T_pad = max(8, ((T + 7) // 8) * 8)               # layout-preserving in-kernel reshape
    NC_pad = ((NC + 127) // 128) * 128               # lane-dense logits store

    # Parameter prep: all layout plumbing / casting is wrapper-side XLA.
    w1k = w1.astype(matmul_dtype)                    # (3, Cin, 64)  tap-major
    w2k = w2.astype(matmul_dtype)                    # (3, 64, 128)  tap-major
    b1r = b1.reshape(1, H1).astype(jnp.float32)
    b2r = b2.reshape(1, H2).astype(jnp.float32)
    awr = aw.reshape(1, H2).astype(jnp.float32)
    abr = ab.reshape(1, 1).astype(jnp.float32)
    fwp = jnp.zeros((H2, NC_pad), jnp.float32).at[:, :NC].set(fw.astype(jnp.float32))
    fbp = jnp.zeros((1, NC_pad), jnp.float32).at[:, :NC].set(fb.reshape(1, NC).astype(jnp.float32))

    n_cores = _num_tensorcores_per_chip()
    vmem_budget = int(min(64 << 20, max(16 << 20, _vmem_capacity_bytes() // 2)))

    BB = block_b if block_b is not None else _pick_block_b(B, T_pad, n_cores, vmem_budget)
    grid_b = pl.cdiv(B, BB)
    B_pad = grid_b * BB

    xp = x
    if B_pad != B or T_pad != T:
        xp = jnp.pad(x, ((0, B_pad - B), (0, T_pad - T), (0, 0)))
    # Flatten (batch, time) in the wrapper (metadata-only) so each grid step streams a
    # lane-dense (BB*T_pad, Cin) tile with no in-kernel relayout.
    M = BB * T_pad
    xf = xp.reshape(grid_b, M, Cin)

    kernel = functools.partial(_temporal_cnn_expert_kernel, T=T, T_pad=T_pad, BB=BB)
    full_spec = lambda a: pl.BlockSpec(a.shape, lambda b, _n=a.ndim: (0,) * _n)

    logits3, pooled3 = pl.pallas_call(
        kernel,
        out_shape=(jax.ShapeDtypeStruct((grid_b, BB, NC_pad), jnp.float32),
                   jax.ShapeDtypeStruct((grid_b, BB, H2), jnp.float32)),
        grid_spec=pltpu.PrefetchScalarGridSpec(
            num_scalar_prefetch=0,
            grid=(grid_b,),
            in_specs=[
                pl.BlockSpec((1, M, Cin), lambda b: (b, 0, 0)),   # x, BB batches per step
                full_spec(w1k), full_spec(b1r),                   # conv1 taps + bias
                full_spec(w2k), full_spec(b2r),                   # conv2 taps + bias
                full_spec(awr), full_spec(abr),                   # attention linear
                full_spec(fwp), full_spec(fbp),                   # classifier (lane-padded)
            ],
            out_specs=[
                pl.BlockSpec((1, BB, NC_pad), lambda b: (b, 0, 0)),   # logits slab (dense)
                pl.BlockSpec((1, BB, H2), lambda b: (b, 0, 0)),       # pooled slab (dense)
            ],
        ),
        compiler_params=pltpu.CompilerParams(
            dimension_semantics=("parallel",),
            vmem_limit_bytes=vmem_budget,
        ),
    )(xf, w1k, b1r, w2k, b2r, awr, abr, fwp, fbp)

    logits = logits3.reshape(B_pad, NC_pad)[:B, :NC]
    pooled = pooled3.reshape(B_pad, H2)[:B]
    return logits, pooled


# --------------------------------------------------------------------------------------
# Pure-JAX reference and test harness
# --------------------------------------------------------------------------------------
def _reference(x, params):
    """Pure-JAX reference of the PyTorch forward (eval-mode dropout)."""
    w1, b1, w2, b2, aw, ab, fw, fb = params

    def conv(h, w, b):
        hp = jnp.pad(h, ((0, 0), (1, 1), (0, 0)))
        y = (jnp.einsum('btc,cd->btd', hp[:, :-2], w[0])
             + jnp.einsum('btc,cd->btd', hp[:, 1:-1], w[1])
             + jnp.einsum('btc,cd->btd', hp[:, 2:], w[2]) + b)
        return jax.nn.relu(y)

    h = conv(conv(x, w1, b1), w2, b2)
    s = jnp.einsum('btc,cd->btd', h, aw) + ab
    a = jax.nn.softmax(s, axis=1)
    pooled = (h * a).sum(axis=1)
    logits = pooled @ fw + fb
    return logits, pooled


def _init_params(key, input_dim, num_classes):
    ks = jax.random.split(key, 8)
    s = 0.1
    # Conv weights are tap-major (K=3, Cin, Cout); real PyTorch Conv1d weights
    # (Cout, Cin, K) must go through convert_torch_conv1d_weight first.
    w1 = s * jax.random.normal(ks[0], (3, input_dim, 64), jnp.float32)
    b1 = s * jax.random.normal(ks[1], (1, 64), jnp.float32)
    w2 = s * jax.random.normal(ks[2], (3, 64, 128), jnp.float32)
    b2 = s * jax.random.normal(ks[3], (1, 128), jnp.float32)
    aw = s * jax.random.normal(ks[4], (128, 1), jnp.float32)
    ab = s * jax.random.normal(ks[5], (1, 1), jnp.float32)
    fw = s * jax.random.normal(ks[6], (128, num_classes), jnp.float32)
    fb = s * jax.random.normal(ks[7], (1, num_classes), jnp.float32)
    return (w1, b1, w2, b2, aw, ab, fw, fb)


if __name__ == "__main__":
    B, T, INPUT_DIM, NUM_CLASSES = 4, 8, 4, 5
    key = jax.random.PRNGKey(0)
    k_x, k_p = jax.random.split(key)
    x = jax.random.normal(k_x, (B, T, INPUT_DIM), jnp.float32)
    params = _init_params(k_p, INPUT_DIM, NUM_CLASSES)

    ref_logits, ref_pooled = _reference(x, params)

    # Default f32 MXU path (approx-reciprocal softmax -> slightly loosened tolerance).
    logits, pooled = temporal_cnn_expert(x, params)
    jax.block_until_ready((logits, pooled))
    assert jnp.allclose(logits, ref_logits, atol=5e-3, rtol=5e-3)
    assert jnp.allclose(pooled, ref_pooled, atol=5e-3, rtol=5e-3)

    # bf16 conv-matmul path (recommended on v6e/v7x); f32 accumulation, looser tolerance.
    logits_bf, pooled_bf = temporal_cnn_expert(x, params, matmul_dtype=jnp.bfloat16)
    jax.block_until_ready((logits_bf, pooled_bf))
    assert jnp.allclose(logits_bf, ref_logits, atol=3e-2, rtol=3e-2)
    assert jnp.allclose(pooled_bf, ref_pooled, atol=3e-2, rtol=3e-2)

    print("KERNEL_OK")
</pallas_src>

<mosaic_0001>
module attributes {stable_mosaic.version = 11 : i64} {
  func.func @_temporal_cnn_expert_kernel(%arg0: i32, %arg1: memref<1x32x4xf32, #tpu.memory_space<vmem>>, %arg2: memref<3x4x64xf32, #tpu.memory_space<vmem>>, %arg3: memref<1x64xf32, #tpu.memory_space<vmem>>, %arg4: memref<3x64x128xf32, #tpu.memory_space<vmem>>, %arg5: memref<1x128xf32, #tpu.memory_space<vmem>>, %arg6: memref<1x128xf32, #tpu.memory_space<vmem>>, %arg7: memref<1x1xf32, #tpu.memory_space<vmem>>, %arg8: memref<128x128xf32, #tpu.memory_space<vmem>>, %arg9: memref<1x128xf32, #tpu.memory_space<vmem>>, %arg10: memref<1x4x128xf32, #tpu.memory_space<vmem>>, %arg11: memref<1x4x128xf32, #tpu.memory_space<vmem>>) attributes {dimension_semantics = [#tpu.dimension_semantics<parallel>], iteration_bounds = array<i64: 1>, scalar_prefetch = 0 : i64, scratch_operands = 0 : i64, tpu.core_type = #tpu.core_type<tc>, window_params = [{transform_indices = @transform_0, window_bounds = array<i64: 1, 32, 4>}, {pipeline_mode = #tpu.pipeline_mode<synchronous>, transform_indices = @transform_1, window_bounds = array<i64: 3, 4, 64>}, {pipeline_mode = #tpu.pipeline_mode<synchronous>, transform_indices = @transform_2, window_bounds = array<i64: 1, 64>}, {pipeline_mode = #tpu.pipeline_mode<synchronous>, transform_indices = @transform_3, window_bounds = array<i64: 3, 64, 128>}, {pipeline_mode = #tpu.pipeline_mode<synchronous>, transform_indices = @transform_4, window_bounds = array<i64: 1, 128>}, {pipeline_mode = #tpu.pipeline_mode<synchronous>, transform_indices = @transform_5, window_bounds = array<i64: 1, 128>}, {pipeline_mode = #tpu.pipeline_mode<synchronous>, transform_indices = @transform_6, window_bounds = array<i64: 1, 1>}, {pipeline_mode = #tpu.pipeline_mode<synchronous>, transform_indices = @transform_7, window_bounds = array<i64: 128, 128>}, {pipeline_mode = #tpu.pipeline_mode<synchronous>, transform_indices = @transform_8, window_bounds = array<i64: 1, 128>}, {transform_indices = @transform_9, window_bounds = array<i64: 1, 4, 128>}, {transform_indices = @transform_10, window_bounds = array<i64: 1, 4, 128>}]} {
    %c0 = arith.constant 0 : index
    %c0_0 = arith.constant 0 : index
    %c0_1 = arith.constant 0 : index
    %0 = vector.load %arg1[%c0, %c0_0, %c0_1] : memref<1x32x4xf32, #tpu.memory_space<vmem>>, vector<1x32x4xf32>
    %1 = vector.shape_cast %0 : vector<1x32x4xf32> to vector<32x4xf32>
    %2 = tpu.iota {dimensions = array<i32: 0>} : vector<32x1xi32>
    %c8_i32 = arith.constant 8 : i32
    %c0_i32 = arith.constant 0 : i32
    %3 = arith.cmpi eq, %c8_i32, %c0_i32 : i32
    %c1_i32 = arith.constant 1 : i32
    %4 = arith.select %3, %c1_i32, %c8_i32 : i32
    %5 = vector.broadcast %4 : i32 to vector<32x1xi32>
    %6 = arith.remsi %2, %5 : vector<32x1xi32>
    %c0_i32_2 = arith.constant 0 : i32
    %7 = vector.broadcast %c0_i32_2 : i32 to vector<32x1xi32>
    %8 = arith.cmpi ne, %6, %7 : vector<32x1xi32>
    %c0_i32_3 = arith.constant 0 : i32
    %9 = vector.broadcast %c0_i32_3 : i32 to vector<32x1xi32>
    %10 = arith.cmpi slt, %6, %9 : vector<32x1xi32>
    %c0_i32_4 = arith.constant 0 : i32
    %11 = arith.cmpi slt, %4, %c0_i32_4 : i32
    %12 = vector.broadcast %11 : i1 to vector<32x1xi1>
    %13 = vector.broadcast %12 : vector<32x1xi1> to vector<32x1xi1>
    %14 = arith.xori %10, %13 : vector<32x1xi1>
    %15 = arith.andi %14, %8 : vector<32x1xi1>
    %16 = vector.broadcast %4 : i32 to vector<32x1xi32>
    %17 = arith.addi %6, %16 : vector<32x1xi32>
    %18 = arith.select %15, %17, %6 : vector<32x1xi1>, vector<32x1xi32>
    %c0_i32_5 = arith.constant 0 : i32
    %19 = vector.broadcast %c0_i32_5 : i32 to vector<32x1xi32>
    %20 = arith.cmpi eq, %18, %19 : vector<32x1xi32>
    %c7_i32 = arith.constant 7 : i32
    %21 = vector.broadcast %c7_i32 : i32 to vector<32x1xi32>
    %22 = arith.cmpi eq, %18, %21 : vector<32x1xi32>
    %c1_i32_6 = arith.constant 1 : i32
    %23 = tpu.dynamic_rotate %1 by %c1_i32_6 dim 0 : vector<32x4xf32>, i32 -> vector<32x4xf32>
    %cst = arith.constant 0.000000e+00 : f32
    %24 = vector.shape_cast %20 : vector<32x1xi1> to vector<32x1xi1>
    %25 = vector.broadcast %24 : vector<32x1xi1> to vector<32x4xi1>
    %26 = vector.broadcast %cst : f32 to vector<32x4xf32>
    %27 = arith.select %25, %26, %23 : vector<32x4xi1>, vector<32x4xf32>
    %c31_i32 = arith.constant 31 : i32
    %28 = tpu.dynamic_rotate %1 by %c31_i32 dim 0 : vector<32x4xf32>, i32 -> vector<32x4xf32>
    %cst_7 = arith.constant 0.000000e+00 : f32
    %29 = vector.shape_cast %22 : vector<32x1xi1> to vector<32x1xi1>
    %30 = vector.broadcast %29 : vector<32x1xi1> to vector<32x4xi1>
    %31 = vector.broadcast %cst_7 : f32 to vector<32x4xf32>
    %32 = arith.select %30, %31, %28 : vector<32x4xi1>, vector<32x4xf32>
    %c1 = arith.constant 1 : index
    %c0_8 = arith.constant 0 : index
    %c0_9 = arith.constant 0 : index
    %33 = vector.load %arg2[%c1, %c0_8, %c0_9] : memref<3x4x64xf32, #tpu.memory_space<vmem>>, vector<1x4x64xf32>
    %34 = vector.shape_cast %33 : vector<1x4x64xf32> to vector<4x64xf32>
    %cst_10 = arith.constant dense<0.000000e+00> : vector<32x64xf32>
    %35 = tpu.matmul %1, %34, %cst_10 {dimension_numbers = #tpu.dot_dimension_numbers<[1], [0], [0], [1], [0, 0, 1, 1], [], []>} : vector<32x4xf32>, vector<4x64xf32>, vector<32x64xf32> -> vector<32x64xf32>
    %c0_11 = arith.constant 0 : index
    %c0_12 = arith.constant 0 : index
    %c0_13 = arith.constant 0 : index
    %36 = vector.load %arg2[%c0_11, %c0_12, %c0_13] : memref<3x4x64xf32, #tpu.memory_space<vmem>>, vector<1x4x64xf32>
    %37 = vector.shape_cast %36 : vector<1x4x64xf32> to vector<4x64xf32>
    %cst_14 = arith.constant dense<0.000000e+00> : vector<32x64xf32>
    %38 = tpu.matmul %27, %37, %cst_14 {dimension_numbers = #tpu.dot_dimension_numbers<[1], [0], [0], [1], [0, 0, 1, 1], [], []>} : vector<32x4xf32>, vector<4x64xf32>, vector<32x64xf32> -> vector<32x64xf32>
    %39 = arith.addf %35, %38 : vector<32x64xf32>
    %c2 = arith.constant 2 : index
    %c0_15 = arith.constant 0 : index
    %c0_16 = arith.constant 0 : index
    %40 = vector.load %arg2[%c2, %c0_15, %c0_16] : memref<3x4x64xf32, #tpu.memory_space<vmem>>, vector<1x4x64xf32>
    %41 = vector.shape_cast %40 : vector<1x4x64xf32> to vector<4x64xf32>
    %cst_17 = arith.constant dense<0.000000e+00> : vector<32x64xf32>
    %42 = tpu.matmul %32, %41, %cst_17 {dimension_numbers = #tpu.dot_dimension_numbers<[1], [0], [0], [1], [0, 0, 1, 1], [], []>} : vector<32x4xf32>, vector<4x64xf32>, vector<32x64xf32> -> vector<32x64xf32>
    %43 = arith.addf %39, %42 : vector<32x64xf32>
    %c0_18 = arith.constant 0 : index
    %c0_19 = arith.constant 0 : index
    %44 = vector.load %arg3[%c0_18, %c0_19] : memref<1x64xf32, #tpu.memory_space<vmem>>, vector<1x64xf32>
    %45 = vector.broadcast %44 : vector<1x64xf32> to vector<32x64xf32>
    %46 = arith.addf %43, %45 : vector<32x64xf32>
    %cst_20 = arith.constant 0.000000e+00 : f32
    %47 = vector.broadcast %cst_20 : f32 to vector<32x64xf32>
    %48 = arith.maximumf %46, %47 : vector<32x64xf32>
    %c1_i32_21 = arith.constant 1 : i32
    %49 = tpu.dynamic_rotate %48 by %c1_i32_21 dim 0 : vector<32x64xf32>, i32 -> vector<32x64xf32>
    %cst_22 = arith.constant 0.000000e+00 : f32
    %50 = vector.shape_cast %20 : vector<32x1xi1> to vector<32x1xi1>
    %51 = vector.broadcast %50 : vector<32x1xi1> to vector<32x64xi1>
    %52 = vector.broadcast %cst_22 : f32 to vector<32x64xf32>
    %53 = arith.select %51, %52, %49 : vector<32x64xi1>, vector<32x64xf32>
    %c31_i32_23 = arith.constant 31 : i32
    %54 = tpu.dynamic_rotate %48 by %c31_i32_23 dim 0 : vector<32x64xf32>, i32 -> vector<32x64xf32>
    %cst_24 = arith.constant 0.000000e+00 : f32
    %55 = vector.shape_cast %22 : vector<32x1xi1> to vector<32x1xi1>
    %56 = vector.broadcast %55 : vector<32x1xi1> to vector<32x64xi1>
    %57 = vector.broadcast %cst_24 : f32 to vector<32x64xf32>
    %58 = arith.select %56, %57, %54 : vector<32x64xi1>, vector<32x64xf32>
    %c1_25 = arith.constant 1 : index
    %c0_26 = arith.constant 0 : index
    %c0_27 = arith.constant 0 : index
    %59 = vector.load %arg4[%c1_25, %c0_26, %c0_27] : memref<3x64x128xf32, #tpu.memory_space<vmem>>, vector<1x64x128xf32>
    %60 = vector.shape_cast %59 : vector<1x64x128xf32> to vector<64x128xf32>
    %cst_28 = arith.constant dense<0.000000e+00> : vector<32x128xf32>
    %61 = tpu.matmul %48, %60, %cst_28 {dimension_numbers = #tpu.dot_dimension_numbers<[1], [0], [0], [1], [0, 0, 1, 1], [], []>} : vector<32x64xf32>, vector<64x128xf32>, vector<32x128xf32> -> vector<32x128xf32>
    %c0_29 = arith.constant 0 : index
    %c0_30 = arith.constant 0 : index
    %c0_31 = arith.constant 0 : index
    %62 = vector.load %arg4[%c0_29, %c0_30, %c0_31] : memref<3x64x128xf32, #tpu.memory_space<vmem>>, vector<1x64x128xf32>
    %63 = vector.shape_cast %62 : vector<1x64x128xf32> to vector<64x128xf32>
    %cst_32 = arith.constant dense<0.000000e+00> : vector<32x128xf32>
    %64 = tpu.matmul %53, %63, %cst_32 {dimension_numbers = #tpu.dot_dimension_numbers<[1], [0], [0], [1], [0, 0, 1, 1], [], []>} : vector<32x64xf32>, vector<64x128xf32>, vector<32x128xf32> -> vector<32x128xf32>
    %65 = arith.addf %61, %64 : vector<32x128xf32>
    %c2_33 = arith.constant 2 : index
    %c0_34 = arith.constant 0 : index
    %c0_35 = arith.constant 0 : index
    %66 = vector.load %arg4[%c2_33, %c0_34, %c0_35] : memref<3x64x128xf32, #tpu.memory_space<vmem>>, vector<1x64x128xf32>
    %67 = vector.shape_cast %66 : vector<1x64x128xf32> to vector<64x128xf32>
    %cst_36 = arith.constant dense<0.000000e+00> : vector<32x128xf32>
    %68 = tpu.matmul %58, %67, %cst_36 {dimension_numbers = #tpu.dot_dimension_numbers<[1], [0], [0], [1], [0, 0, 1, 1], [], []>} : vector<32x64xf32>, vector<64x128xf32>, vector<32x128xf32> -> vector<32x128xf32>
    %69 = arith.addf %65, %68 : vector<32x128xf32>
    %c0_37 = arith.constant 0 : index
    %c0_38 = arith.constant 0 : index
    %70 = vector.load %arg5[%c0_37, %c0_38] : memref<1x128xf32, #tpu.memory_space<vmem>>, vector<1x128xf32>
    %71 = vector.broadcast %70 : vector<1x128xf32> to vector<32x128xf32>
    %72 = arith.addf %69, %71 : vector<32x128xf32>
    %cst_39 = arith.constant 0.000000e+00 : f32
    %73 = vector.broadcast %cst_39 : f32 to vector<32x128xf32>
    %74 = arith.maximumf %72, %73 : vector<32x128xf32>
    %75 = vector.shape_cast %74 : vector<32x128xf32> to vector<4x8x128xf32>
    %c0_40 = arith.constant 0 : index
    %c0_41 = arith.constant 0 : index
    %76 = vector.load %arg6[%c0_40, %c0_41] : memref<1x128xf32, #tpu.memory_space<vmem>>, vector<1x128xf32>
    %77 = vector.shape_cast %76 : vector<1x128xf32> to vector<1x1x128xf32>
    %78 = vector.broadcast %77 : vector<1x1x128xf32> to vector<4x8x128xf32>
    %79 = arith.mulf %75, %78 : vector<4x8x128xf32>
    %cst_42 = arith.constant dense<0.000000e+00> : vector<4x8xf32>
    %80 = vector.multi_reduction <add>, %79, %cst_42 [2] : vector<4x8x128xf32> to vector<4x8xf32>
    %c0_43 = arith.constant 0 : index
    %c0_44 = arith.constant 0 : index
    %81 = vector.load %arg7[%c0_43, %c0_44] : memref<1x1xf32, #tpu.memory_space<vmem>>, vector<1x1xf32>
    %82 = vector.broadcast %81 : vector<1x1xf32> to vector<4x8xf32>
    %83 = arith.addf %80, %82 : vector<4x8xf32>
    %cst_45 = arith.constant dense<0xFF800000> : vector<4xf32>
    %84 = vector.multi_reduction <maximumf>, %83, %cst_45 [1] : vector<4x8xf32> to vector<4xf32>
    %85 = vector.shape_cast %84 : vector<4xf32> to vector<4x1xf32>
    %86 = vector.broadcast %85 : vector<4x1xf32> to vector<4x8xf32>
    %87 = arith.subf %83, %86 : vector<4x8xf32>
    %88 = math.exp %87 : vector<4x8xf32>
    %cst_46 = arith.constant dense<0.000000e+00> : vector<4xf32>
    %89 = vector.multi_reduction <add>, %88, %cst_46 [1] : vector<4x8xf32> to vector<4xf32>
    %90 = vector.shape_cast %89 : vector<4xf32> to vector<4x1xf32>
    %91 = tpu.reciprocal %90 {approx = true} : vector<4x1xf32> -> vector<4x1xf32>
    %92 = vector.broadcast %91 : vector<4x1xf32> to vector<4x8xf32>
    %93 = arith.mulf %88, %92 : vector<4x8xf32>
    %94 = vector.shape_cast %93 : vector<4x8xf32> to vector<4x8x1xf32>
    %95 = vector.broadcast %94 : vector<4x8x1xf32> to vector<4x8x128xf32>
    %96 = arith.mulf %75, %95 : vector<4x8x128xf32>
    %cst_47 = arith.constant dense<0.000000e+00> : vector<4x128xf32>
    %97 = vector.multi_reduction <add>, %96, %cst_47 [1] : vector<4x8x128xf32> to vector<4x128xf32>
    %c0_48 = arith.constant 0 : index
    %c0_49 = arith.constant 0 : index
    %c0_50 = arith.constant 0 : index
    %98 = vector.load %arg11[%c0_48, %c0_49, %c0_50] : memref<1x4x128xf32, #tpu.memory_space<vmem>>, vector<1x4x128xf32>
    %99 = vector.shape_cast %98 : vector<1x4x128xf32> to vector<4x128xf32>
    %100 = vector.shape_cast %97 : vector<4x128xf32> to vector<1x4x128xf32>
    tpu.vector_store %arg11[%c0_48, %c0_49, %c0_50], %100 {strides = array<i32>} : memref<1x4x128xf32, #tpu.memory_space<vmem>>, vector<1x4x128xf32>,
    %c0_51 = arith.constant 0 : index
    %c0_52 = arith.constant 0 : index
    %101 = vector.load %arg8[%c0_51, %c0_52] : memref<128x128xf32, #tpu.memory_space<vmem>>, vector<128x128xf32>
    %cst_53 = arith.constant dense<0.000000e+00> : vector<4x128xf32>
    %102 = tpu.matmul %97, %101, %cst_53 {dimension_numbers = #tpu.dot_dimension_numbers<[1], [0], [0], [1], [0, 0, 1, 1], [], []>} : vector<4x128xf32>, vector<128x128xf32>, vector<4x128xf32> -> vector<4x128xf32>
    %c0_54 = arith.constant 0 : index
    %c0_55 = arith.constant 0 : index
    %103 = vector.load %arg9[%c0_54, %c0_55] : memref<1x128xf32, #tpu.memory_space<vmem>>, vector<1x128xf32>
    %104 = vector.broadcast %103 : vector<1x128xf32> to vector<4x128xf32>
    %105 = arith.addf %102, %104 : vector<4x128xf32>
    %c0_56 = arith.constant 0 : index
    %c0_57 = arith.constant 0 : index
    %c0_58 = arith.constant 0 : index
    %106 = vector.load %arg10[%c0_56, %c0_57, %c0_58] : memref<1x4x128xf32, #tpu.memory_space<vmem>>, vector<1x4x128xf32>
    %107 = vector.shape_cast %106 : vector<1x4x128xf32> to vector<4x128xf32>
    %108 = vector.shape_cast %105 : vector<4x128xf32> to vector<1x4x128xf32>
    tpu.vector_store %arg10[%c0_56, %c0_57, %c0_58], %108 {strides = array<i32>} : memref<1x4x128xf32, #tpu.memory_space<vmem>>, vector<1x4x128xf32>,
    return
  }
  func.func @transform_0(%arg0: i32) -> (i32, i32, i32) {
    %c0_i32 = arith.constant 0 : i32
    %c0_i32_0 = arith.constant 0 : i32
    %c0_i32_1 = arith.constant 0 : i32
    return %arg0, %c0_i32, %c0_i32_0 : i32, i32, i32
  }
  func.func @transform_1(%arg0: i32) -> (i32, i32, i32) {
    %c0_i32 = arith.constant 0 : i32
    %c0_i32_0 = arith.constant 0 : i32
    %c0_i32_1 = arith.constant 0 : i32
    %c0_i32_2 = arith.constant 0 : i32
    return %c0_i32, %c0_i32_0, %c0_i32_1 : i32, i32, i32
  }
  func.func @transform_2(%arg0: i32) -> (i32, i32) {
    %c0_i32 = arith.constant 0 : i32
    %c0_i32_0 = arith.constant 0 : i32
    %c0_i32_1 = arith.constant 0 : i32
    return %c0_i32, %c0_i32_0 : i32, i32
  }
  func.func @transform_3(%arg0: i32) -> (i32, i32, i32) {
    %c0_i32 = arith.constant 0 : i32
    %c0_i32_0 = arith.constant 0 : i32
    %c0_i32_1 = arith.constant 0 : i32
    %c0_i32_2 = arith.constant 0 : i32
    return %c0_i32, %c0_i32_0, %c0_i32_1 : i32, i32, i32
  }
  func.func @transform_4(%arg0: i32) -> (i32, i32) {
    %c0_i32 = arith.constant 0 : i32
    %c0_i32_0 = arith.constant 0 : i32
    %c0_i32_1 = arith.constant 0 : i32
    return %c0_i32, %c0_i32_0 : i32, i32
  }
  func.func @transform_5(%arg0: i32) -> (i32, i32) {
    %c0_i32 = arith.constant 0 : i32
    %c0_i32_0 = arith.constant 0 : i32
    %c0_i32_1 = arith.constant 0 : i32
    return %c0_i32, %c0_i32_0 : i32, i32
  }
  func.func @transform_6(%arg0: i32) -> (i32, i32) {
    %c0_i32 = arith.constant 0 : i32
    %c0_i32_0 = arith.constant 0 : i32
    %c0_i32_1 = arith.constant 0 : i32
    return %c0_i32, %c0_i32_0 : i32, i32
  }
  func.func @transform_7(%arg0: i32) -> (i32, i32) {
    %c0_i32 = arith.constant 0 : i32
    %c0_i32_0 = arith.constant 0 : i32
    %c0_i32_1 = arith.constant 0 : i32
    return %c0_i32, %c0_i32_0 : i32, i32
  }
  func.func @transform_8(%arg0: i32) -> (i32, i32) {
    %c0_i32 = arith.constant 0 : i32
    %c0_i32_0 = arith.constant 0 : i32
    %c0_i32_1 = arith.constant 0 : i32
    return %c0_i32, %c0_i32_0 : i32, i32
  }
  func.func @transform_9(%arg0: i32) -> (i32, i32, i32) {
    %c0_i32 = arith.constant 0 : i32
    %c0_i32_0 = arith.constant 0 : i32
    %c0_i32_1 = arith.constant 0 : i32
    return %arg0, %c0_i32, %c0_i32_0 : i32, i32, i32
  }
  func.func @transform_10(%arg0: i32) -> (i32, i32, i32) {
    %c0_i32 = arith.constant 0 : i32
    %c0_i32_0 = arith.constant 0 : i32
    %c0_i32_1 = arith.constant 0 : i32
    return %arg0, %c0_i32, %c0_i32_0 : i32, i32, i32
  }
}

</mosaic_0001>

<bundles_post_ra>
// kernel: tpu_custom_call.1
= control target key start
LH: loop header
LB: loop body
LE: loop exit
PB: predicated region body
PF: predicated region fallthrough
CT: control target
= control target key end

     0   :  { %s2246_s0 = inlined_call_operand.hbm [shape: f32[1,32,4], index: 0, kind: input, shape index: {}]   ;;  %s2247_s1 = inlined_call_operand.hbm [shape: f32[3,4,64], index: 1, kind: input, shape index: {}]   ;;  %s2248_s2 = inlined_call_operand.hbm [shape: f32[1,64], index: 2, kind: input, shape index: {}]   ;;  %s2249_s3 = inlined_call_operand.hbm [shape: f32[3,64,128], index: 3, kind: input, shape index: {}]   ;;  %s2250_s4 = inlined_call_operand.hbm [shape: f32[1,128], index: 4, kind: input, shape index: {}]   ;;  %s2251_s5 = inlined_call_operand.hbm [shape: f32[1,128], index: 5, kind: input, shape index: {}]   ;;  %s2252_s6 = inlined_call_operand.<no memory space> [shape: f32[1,1], index: 6, kind: input, shape index: {}]   ;;  %s2253_s7 = inlined_call_operand.hbm [shape: f32[128,128], index: 7, kind: input, shape index: {}]   ;;  %s2254_s8 = inlined_call_operand.hbm [shape: f32[1,128], index: 8, kind: input, shape index: {}]   ;;  %s2255_s9 = inlined_call_operand.hbm [shape: f32[1,4,128], index: 9, kind: output, shape index: {0}]   ;;  %s2256_s10 = inlined_call_operand.hbm [shape: f32[1,4,128], index: 10, kind: output, shape index: {1}]  }
   0x1   :  { %v16_v0 = vstv %s2252_s6 }
   0x2   :  { %17 = vst [vmem:[#allocation2] sm:$0x1] %v16_v0 }
   0x3   :  { %18 = vsyncpa [#allocation4], 0 }
   0x4   :  { %19 = vsyncpa [#allocation7], 0 }
   0x5   :  { %20 = vsyncpa [#allocation10], 0 }
   0x6   :  { %21 = vsyncpa [#allocation13], 0 }
   0x7   :  { %22 = vsyncpa [#allocation16], 0 }
   0x8   :  { %23 = vsyncpa [#allocation5], 0 }
   0x9   :  { %24 = vsyncpa [#allocation19], 0  ;;  %s1858_s15 = smov [#allocation6]   ;;  %s1624_s19 = scalar_lea.hbm %s2247_s1, 192 }
   0xa   :  { %s42_s16 = sshll.u32 %s1858_s15, 4  ;;  %p1625_p0 = scmp.ne.s32.totalorder %s2247_s1, %s1624_s19  ;;  %s43_s16 = int_to_ptr.vmem [resolvable:$true] %s42_s16 }
   0xb   :  { %p1628_p1 = scmp.lt.u32.totalorder %s1624_s19, %s2247_s1 }
   0xd   :  { %p1630_p2 = pnand %p1628_p1, %p1625_p0 }
   0xf   :  { %1633 = shalt.err (!%p1630_p2)
}
  0x10   :  { %s1634_s23 = scalar_lea.vmem %s43_s16, 192  ;;  %p1639_p4 = scmp.lt.s32.totalorder %s43_s16, %s43_s16 }
  0x11   :  { %p1635_p3 = scmp.ne.s32.totalorder %s43_s16, %s1634_s23  ;;  %p1640_p5 = scmp.lt.s32.totalorder %s1634_s23, %s1634_s23 }
  0x13   :  { %p1641_p6 = por %p1640_p5, %p1639_p4 }
  0x15   :  { %p1642_p7 = pnand %p1641_p6, %p1635_p3 }
  0x17   :  { %1645 = shalt.err (!%p1642_p7)
}
  0x18   :  { %s1859_s24 = smov 64   ;;  %s1860_s25 = smov 4  }
  0x19   :  { %48 = dma.hbm_to_vmem [thread:$0]  %s2247_s1, 192, %s43_s16, [#allocation7], %s1859_s24, %s1859_s24, %s1860_s25  }
  0x1a   :  { %s1861_s28 = smov [#allocation9]   ;;  %s1862_s30 = smov [#allocation12]  }
  0x1b   :  { %s64_s29 = sshll.u32 %s1861_s28, 4  ;;  %s87_s11 = sshll.u32 %s1862_s30, 4  ;;  %s65_s29 = int_to_ptr.vmem [resolvable:$true] %s64_s29  ;;  %s88_s11 = int_to_ptr.vmem [resolvable:$true] %s87_s11 }
  0x1c   :  { %s1646_s14 = scalar_lea.hbm %s2249_s3, 3072 }
  0x1d   :  { %p1647_p8 = scmp.ne.s32.totalorder %s2249_s3, %s1646_s14  ;;  %p1650_p9 = scmp.lt.u32.totalorder %s1646_s14, %s2249_s3 }
  0x1f   :  { %p1652_p10 = pnand %p1650_p9, %p1647_p8 }
  0x21   :  { %1655 = shalt.err (!%p1652_p10)
}
  0x22   :  { %s1656_s1 = scalar_lea.vmem %s65_s29, 3072  ;;  %p1661_p12 = scmp.lt.s32.totalorder %s65_s29, %s65_s29 }
  0x23   :  { %p1657_p11 = scmp.ne.s32.totalorder %s65_s29, %s1656_s1  ;;  %p1662_p13 = scmp.lt.s32.totalorder %s1656_s1, %s1656_s1 }
  0x25   :  { %p1663_p0 = por %p1662_p13, %p1661_p12 }
  0x27   :  { %p1664_p1 = pnand %p1663_p0, %p1657_p11 }
  0x29   :  { %1667 = shalt.err (!%p1664_p1)
}
  0x2a   :  { %s1863_s16 = smov 128   ;;  %s1864_s20 = smov 8  }
  0x2b   :  { %70 = dma.hbm_to_vmem [thread:$0]  %s2249_s3, 3072, %s65_s29, [#allocation10], %s1863_s16, %s1863_s16, %s1864_s20  }
  0x2c   :  { %s1668_s24 = scalar_lea.hbm %s2251_s5, 16 }
  0x2d   :  { %p1669_p2 = scmp.ne.s32.totalorder %s2251_s5, %s1668_s24  ;;  %p1672_p3 = scmp.lt.u32.totalorder %s1668_s24, %s2251_s5 }
  0x2f   :  { %p1674_p4 = pnand %p1672_p3, %p1669_p2 }
  0x31   :  { %1677 = shalt.err (!%p1674_p4)
}
  0x32   :  { %s1678_s30 = scalar_lea.vmem %s88_s11, 16  ;;  %s1682_s12 = scalar_lea.vmem %s88_s11, 32 }
  0x33   :  { %p1679_p5 = scmp.ne.s32.totalorder %s88_s11, %s1678_s30  ;;  %p1683_p6 = scmp.lt.s32.totalorder %s88_s11, %s88_s11 }
  0x34   :  { %p1684_p7 = scmp.lt.s32.totalorder %s1682_s12, %s1678_s30 }
  0x36   :  { %p1685_p8 = por %p1684_p7, %p1683_p6 }
  0x38   :  { %p1686_p9 = pnand %p1685_p8, %p1679_p5 }
  0x3a   :  { %1689 = shalt.err (!%p1686_p9)
}
  0x3b   :  { %90 = dma.hbm_to_vmem [thread:$0]  %s2251_s5, 16, %s88_s11, [#allocation13]  }
  0x3c   :  { %s1865_s13 = smov [#allocation3]   ;;  %s1866_s15 = smov [#allocation8]  }
  0x3d   :  { %s30_s14 = sshll.u32 %s1865_s13, 4  ;;  %s55_s17 = sshll.u32 %s1866_s15, 4  ;;  %s31_s14 = int_to_ptr.vmem [resolvable:$true] %s30_s14  ;;  %s56_s17 = int_to_ptr.vmem [resolvable:$true] %s55_s17 }
  0x3e   :  { %s1690_s1 = scalar_lea.hbm %s2246_s0, 512 }
  0x3f   :  { %p1691_p10 = scmp.ne.s32.totalorder %s2246_s0, %s1690_s1  ;;  %p1694_p11 = scmp.lt.u32.totalorder %s1690_s1, %s2246_s0 }
  0x41   :  { %p1696_p12 = pnand %p1694_p11, %p1691_p10 }
  0x43   :  { %1699 = shalt.err (!%p1696_p12)
}
  0x44   :  { %s1700_s5 = scalar_lea.vmem %s31_s14, 512  ;;  %p1705_p0 = scmp.lt.s32.totalorder %s31_s14, %s31_s14 }
  0x45   :  { %p1701_p13 = scmp.ne.s32.totalorder %s31_s14, %s1700_s5  ;;  %p1706_p1 = scmp.lt.s32.totalorder %s1700_s5, %s1700_s5 }
  0x47   :  { %p1707_p2 = por %p1706_p1, %p1705_p0 }
  0x49   :  { %p1708_p3 = pnand %p1707_p2, %p1701_p13 }
  0x4b   :  { %1711 = shalt.err (!%p1708_p3)
}
  0x4c   :  { %36 = dma.hbm_to_vmem [thread:$0]  %s2246_s0, 512, %s31_s14, [#allocation4], %s1863_s16, %s1863_s16, %s1864_s20  }
  0x4d   :  { %s1712_s27 = scalar_lea.hbm %s2248_s2, 16 }
  0x4e   :  { %p1713_p4 = scmp.ne.s32.totalorder %s2248_s2, %s1712_s27  ;;  %p1716_p5 = scmp.lt.u32.totalorder %s1712_s27, %s2248_s2 }
  0x50   :  { %p1718_p6 = pnand %p1716_p5, %p1713_p4 }
  0x52   :  { %1721 = shalt.err (!%p1718_p6)
}
  0x53   :  { %s1722_s29 = scalar_lea.vmem %s56_s17, 16  ;;  %s1726_s13 = scalar_lea.vmem %s56_s17, 32 }
  0x54   :  { %p1723_p7 = scmp.ne.s32.totalorder %s56_s17, %s1722_s29  ;;  %p1727_p8 = scmp.lt.s32.totalorder %s56_s17, %s56_s17 }
  0x55   :  { %p1728_p9 = scmp.lt.s32.totalorder %s1726_s13, %s1722_s29 }
  0x57   :  { %p1729_p10 = por %p1728_p9, %p1727_p8 }
  0x59   :  { %p1730_p11 = pnand %p1729_p10, %p1723_p7 }
  0x5b   :  { %1733 = shalt.err (!%p1730_p11)
}
  0x5c   :  { %58 = dma.hbm_to_vmem [thread:$0]  %s2248_s2, 16, %s56_s17, [#allocation7]  }
  0x5d   :  { %s1867_s15 = smov [#allocation11]   ;;  %s1868_s19 = smov [#allocation14]  }
  0x5e   :  { %s77_s18 = sshll.u32 %s1867_s15, 4  ;;  %s98_s1 = sshll.u32 %s1868_s19, 4  ;;  %s78_s18 = int_to_ptr.vmem [resolvable:$true] %s77_s18  ;;  %s99_s1 = int_to_ptr.vmem [resolvable:$true] %s98_s1 }
  0x5f   :  { %s1734_s22 = scalar_lea.hbm %s2250_s4, 16 }
  0x60   :  { %p1735_p12 = scmp.ne.s32.totalorder %s2250_s4, %s1734_s22  ;;  %p1738_p13 = scmp.lt.u32.totalorder %s1734_s22, %s2250_s4 }
  0x62   :  { %p1740_p0 = pnand %p1738_p13, %p1735_p12 }
  0x64   :  { %1743 = shalt.err (!%p1740_p0)
}
  0x65   :  { %s1744_s2 = scalar_lea.vmem %s78_s18, 16  ;;  %s1748_s17 = scalar_lea.vmem %s78_s18, 32 }
  0x66   :  { %p1745_p1 = scmp.ne.s32.totalorder %s78_s18, %s1744_s2  ;;  %p1749_p2 = scmp.lt.s32.totalorder %s78_s18, %s78_s18 }
  0x67   :  { %p1750_p3 = scmp.lt.s32.totalorder %s1748_s17, %s1744_s2 }
  0x69   :  { %p1751_p4 = por %p1750_p3, %p1749_p2 }
  0x6b   :  { %p1752_p5 = pnand %p1751_p4, %p1745_p1 }
  0x6d   :  { %1755 = shalt.err (!%p1752_p5)
}
  0x6e   :  { %80 = dma.hbm_to_vmem [thread:$0]  %s2250_s4, 16, %s78_s18, [#allocation10]  }
  0x6f   :  { %s1756_s30 = scalar_lea.hbm %s2253_s7, 2048 }
  0x70   :  { %p1757_p6 = scmp.ne.s32.totalorder %s2253_s7, %s1756_s30  ;;  %p1760_p7 = scmp.lt.u32.totalorder %s1756_s30, %s2253_s7 }
  0x72   :  { %p1762_p8 = pnand %p1760_p7, %p1757_p6 }
  0x74   :  { %1765 = shalt.err (!%p1762_p8)
}
  0x75   :  { %s1766_s0 = scalar_lea.vmem %s99_s1, 2048  ;;  %p1771_p10 = scmp.lt.s32.totalorder %s99_s1, %s99_s1 }
  0x76   :  { %p1767_p9 = scmp.ne.s32.totalorder %s99_s1, %s1766_s0  ;;  %p1772_p11 = scmp.lt.s32.totalorder %s1766_s0, %s1766_s0 }
  0x78   :  { %p1773_p12 = por %p1772_p11, %p1771_p10 }
  0x7a   :  { %p1774_p13 = pnand %p1773_p12, %p1767_p9 }
  0x7c   :  { %1777 = shalt.err (!%p1774_p13)
}
  0x7d   :  { %104 = dma.hbm_to_vmem [thread:$0]  %s2253_s7, 2048, %s99_s1, [#allocation13], %s1863_s16, %s1863_s16, %s1864_s20  }
  0x7e   :  { %s1869_s15 = smov [#allocation15]   ;;  %s1778_s6 = scalar_lea.hbm %s2254_s8, 16 }
  0x7f   :  { %s111_s18 = sshll.u32 %s1869_s15, 4  ;;  %p1779_p0 = scmp.ne.s32.totalorder %s2254_s8, %s1778_s6  ;;  %s112_s18 = int_to_ptr.vmem [resolvable:$true] %s111_s18 }
  0x80   :  { %p1782_p1 = scmp.lt.u32.totalorder %s1778_s6, %s2254_s8 }
  0x82   :  { %p1784_p2 = pnand %p1782_p1, %p1779_p0 }
  0x84   :  { %1787 = shalt.err (!%p1784_p2)
}
  0x85   :  { %s1788_s24 = scalar_lea.vmem %s112_s18, 16  ;;  %s1792_s7 = scalar_lea.vmem %s112_s18, 32 }
  0x86   :  { %p1789_p3 = scmp.ne.s32.totalorder %s112_s18, %s1788_s24  ;;  %p1793_p4 = scmp.lt.s32.totalorder %s112_s18, %s112_s18 }
  0x87   :  { %p1794_p5 = scmp.lt.s32.totalorder %s1792_s7, %s1788_s24 }
  0x89   :  { %p1795_p6 = por %p1794_p5, %p1793_p4 }
  0x8b   :  { %p1796_p7 = pnand %p1795_p6, %p1789_p3 }
  0x8d   :  { %1799 = shalt.err (!%p1796_p7)
}
  0x8e   :  { %114 = dma.hbm_to_vmem [thread:$0]  %s2254_s8, 16, %s112_s18, [#allocation16]  }
  0x8f   :  { %1844 = dma.done.wait [#allocation4], 512  }
  0x90   :  { %1845 = vsyncadd [#allocation4], 4294966784 }
  0x91   :  { %1846 = dma.done.wait [#allocation7], 208  }
  0x92   :  { %1847 = vsyncadd [#allocation7], 4294967088 }
  0x93   :  { %1848 = dma.done.wait [#allocation10], 3088  }
  0x94   :  { %1849 = vsyncadd [#allocation10], 4294964208 }
  0x95   :  { %1850 = dma.done.wait [#allocation13], 2064  }
  0x96   :  { %1851 = vsyncadd [#allocation13], 4294965232 }
  0x97   :  { %1852 = dma.done.wait [#allocation16], 16  }
  0x98   :  { %1853 = vsyncadd [#allocation16], 4294967280  ;;  %v143_v1 = vlaneseq  ;;  %vm262_vm0 = vcmask 1043456   ;;  %v248_v9 = vld [vmem:[#allocation6] sm:$0xf]  ;;  %v142_v11 = vld [vmem:[#allocation3 + $0x18] sm:$0xff] }
  0x99   :  { %v139_v10 = vld [vmem:[#allocation3] sm:$0xff]  ;;  %1381 = vmatprep.subr.msk.mxu0 %vm262_vm0, %v248_v9  ;;  %v207_v15 = vrot.slane %v142_v11, 7  ;;  %v140_v17 = vld [vmem:[#allocation3 + $0x8] sm:$0xff]  ;;  %vm249_vm3 = vcmask 31744   ;;  %v141_v20 = vld [vmem:[#allocation3 + $0x10] sm:$0xff]  ;;  %v228_v41 = vrot.slane %v142_v11, 1 }
  0x9a   :  { %v2040_v2 = vshrl.u32 %v143_v1, 7  ;;  %v204_v14 = vrot.slane %v139_v10, 7  ;;  %v247_v16 = vld [vmem:[#allocation6 + $0x4] sm:$0xf]  ;;  %1382 = vmatpush3.msk.msra.mxu0 %vm262_vm0, %v248_v9  ;;  %v205_v19 = vrot.slane %v140_v17, 7  ;;  %v206_v23 = vrot.slane %v141_v20, 7 }
  0x9b   :  { %1389 = vmatprep.subr.msk.mxu0 %vm262_vm0, %v247_v16  ;;  %v452_v30 = vld [vmem:[#allocation6 + $0x8] sm:$0xf]  ;;  %v605_v31 = vld [vmem:[#allocation9] sm:$0xff]  ;;  %v606_v32 = vld [vmem:[#allocation9 + $0x8] sm:$0xff]  ;;  %v225_v36 = vrot.slane %v139_v10, 1  ;;  %v226_v37 = vrot.slane %v140_v17, 1 }
  0x9c   :  { %v152_v3 = vand.u32 7, %v2040_v2  ;;  %v145_v4 = vadd.s32 8, %v2040_v2  ;;  %v146_v5 = vadd.s32 16, %v2040_v2  ;;  %v2046_v6 = vadd.s32 24, %v2040_v2  ;;  %v607_v52 = vld [vmem:[#allocation9 + $0x10] sm:$0xff]  ;;  %v608_v53 = vld [vmem:[#allocation9 + $0x18] sm:$0xff] }
  0x9d   :  { %vm208_vm1 = vcmp.lt.s32.totalorder %v2040_v2, 1  ;;  %v1506_v35 = vpack.c.bf16 %v606_v32, %v605_v31  ;;  %vm229_vm7 = vcmp.lt.s32.totalorder %v2040_v2, 7  ;;  %v227_v38 = vrot.slane %v141_v20, 1  ;;  %v609_v55 = vld [vmem:[#allocation9 + $0x20] sm:$0xff]  ;;  %v610_v56 = vld [vmem:[#allocation9 + $0x28] sm:$0xff]  ;;  %v611_v58 = vld [vmem:[#allocation9 + $0x30] sm:$0xff] }
  0x9e   :  { %v159_v7 = vand.u32 7, %v145_v4  ;;  %v166_v8 = vand.u32 7, %v146_v5  ;;  %v173_v12 = vand.u32 7, %v2046_v6  ;;  %vm2051_vm2 = vcmp.eq.s32.totalorder %v152_v3, 0  ;;  %v612_v59 = vld [vmem:[#allocation9 + $0x38] sm:$0xff]  ;;  %v597_v61 = vld [vmem:[#allocation9 + $0x40] sm:$0xff] }
  0x9f   :  { %v212_v21 = vsel %vm208_vm1, %v207_v15, %v204_v14  ;;  %v211_v25 = vsel %vm208_vm1, %v204_v14, %v205_v19  ;;  %v210_v28 = vsel %vm208_vm1, %v205_v19, %v206_v23  ;;  %v209_v29 = vsel %vm208_vm1, %v206_v23, %v207_v15  ;;  %1507 = vmatprep.subr.bf16.mxu1 %v1506_v35  ;;  %v598_v62 = vld [vmem:[#allocation9 + $0x48] sm:$0xff]  ;;  %v1296_v0 = vld [vmem:[#allocation8] ss:$0 sm:$0xff]  ;;  %v599_v23 = vld [vmem:[#allocation9 + $0x50] sm:$0xff]  ;;  %s1874_s8 = smov [#allocation18]  }
  0xa0   :  { %vm2056_vm4 = vcmp.eq.s32.totalorder %v159_v7, 0  ;;  %vm2063_vm5 = vcmp.eq.s32.totalorder %v166_v8, 0  ;;  %v221_v24 = vsel %vm2051_vm2, 0.0, %v212_v21  ;;  %vm2071_vm6 = vcmp.eq.s32.totalorder %v173_v12, 0  ;;  %1509 = vmatpush3.bf16.msra.mxu1 %v1506_v35  ;;  %v602_v13 = vld [vmem:[#allocation9 + $0x68] sm:$0xff]  ;;  %v603_v18 = vld [vmem:[#allocation9 + $0x70] sm:$0xff] }
  0xa1   :  { %1383 = vmatprep.mubr.msk.f32.mxu0 %vm249_vm3, %v221_v24  ;;  %v222_v27 = vsel %vm2056_vm4, 0.0, %v211_v25  ;;  %v223_v33 = vsel %vm2063_vm5, 0.0, %v210_v28  ;;  %v224_v34 = vsel %vm2071_vm6, 0.0, %v209_v29  ;;  %vm2093_vm8 = vcmp.eq.s32.totalorder %v152_v3, 7  ;;  %v600_v24 = vld [vmem:[#allocation9 + $0x58] sm:$0xff]  ;;  %s1264_s1 = sshll.u32 %s1874_s8, 4  ;;  %s1265_s1 = int_to_ptr.vmem [resolvable:$true] %s1264_s1 }
  0xa2   :  { %1384 = vmatmul.mubr.msk.f32.vlgmr.msra.gmra.mrb[0].mxu0 %vm249_vm3, %v222_v27  ;;  %v232_v40 = vsel %vm229_vm7, %v225_v36, %v226_v37  ;;  %vm2102_vm9 = vcmp.eq.s32.totalorder %v159_v7, 7  ;;  %v231_v44 = vsel %vm229_vm7, %v226_v37, %v227_v38  ;;  %vm2110_vm10 = vcmp.eq.s32.totalorder %v166_v8, 7  ;;  %s1800_s2 = scalar_lea.vmem %s1265_s1, 64  ;;  %p1805_p9 = scmp.lt.s32.totalorder %s1265_s1, %s1265_s1 }
  0xa3   :  { %1390 = vmatpush3.msk.msra.mxu0 %vm262_vm0, %v247_v16  ;;  %1386 = vmatprep.mubr.msk.f32.mxu0 %vm249_vm3, %v223_v33  ;;  %v242_v43 = vsel %vm2093_vm8, 0.0, %v232_v40  ;;  %v230_v46 = vsel %vm229_vm7, %v227_v38, %v228_v41  ;;  %v243_v47 = vsel %vm2102_vm9, 0.0, %v231_v44  ;;  %vm2122_vm11 = vcmp.eq.s32.totalorder %v173_v12, 7  ;;  %p1801_p8 = scmp.ne.s32.totalorder %s1265_s1, %s1800_s2  ;;  %p1806_p10 = scmp.lt.s32.totalorder %s1800_s2, %s1800_s2 }
  0xa4   :  { %1397 = vmatprep.subr.msk.mxu0 %vm262_vm0, %v452_v30  ;;  %v244_v48 = vsel %vm2110_vm10, 0.0, %v230_v46  ;;  %v233_v50 = vsel %vm229_vm7, %v228_v41, %v225_v36  ;;  %v1510_v54 = vpack.c.bf16 %v608_v53, %v607_v52  ;;  %v1514_v57 = vpack.c.bf16 %v610_v56, %v609_v55  ;;  %v601_v41 = vld [vmem:[#allocation9 + $0x60] sm:$0xff]  ;;  %v811_v52 = vld [vmem:[#allocation9 + $0x90] sm:$0xff]  ;;  %v812_v53 = vld [vmem:[#allocation9 + $0x98] sm:$0xff] }
  0xa5   :  { %v245_v51 = vsel %vm2122_vm11, 0.0, %v233_v50  ;;  %v1518_v60 = vpack.c.bf16 %v612_v59, %v611_v58  ;;  %v1522_v63 = vpack.c.bf16 %v598_v62, %v597_v61  ;;  %vm613_vm12 = vcmask 523264   ;;  %v810_v50 = vld [vmem:[#allocation9 + $0x88] sm:$0xff]  ;;  %v816_v58 = vld [vmem:[#allocation9 + $0xb8] sm:$0xff]  ;;  %p1807_p11 = por %p1806_p10, %p1805_p9 }
  0xa6   :  { %1387 = vmatmul.mubr.msk.f32.gmra.mrb[2].mxu0 %vm249_vm3, %v224_v34  ;;  %1511 = vmatprep.subr.bf16.mxu1 %v1510_v54  ;;  %v1526_v32 = vpack.c.bf16 %v600_v24, %v599_v23  ;;  %v1530_v44 = vpack.c.bf16 %v602_v13, %v601_v41  ;;  %v1542_v26 = vpack.c.bf16 %v812_v53, %v811_v52  ;;  %v814_v55 = vld [vmem:[#allocation9 + $0xa8] sm:$0xff]  ;;  %v971_v23 = vand.u32 127, %v143_v1 }
  0xa7   :  { %1391 = vmatprep.mubr.msk.f32.mxu0 %vm249_vm3, %v139_v10  ;;  %1513 = vmatpush3.bf16.msra.mxu1 %v1510_v54  ;;  %v813_v54 = vld [vmem:[#allocation9 + $0xa0] sm:$0xff]  ;;  %vm988_vm13 = vcmask 1041409   ;;  %vm990_vm14 = vcmask 1042434   ;;  %vm992_vm15 = vcmask 1043459   ;;  %v1002_v41 = vsub.s32 0, %v2040_v2  ;;  %p1808_p12 = pnand %p1807_p11, %p1801_p8 }
  0xa8   :  { %1515 = vmatprep.subr.bf16.mxu1 %v1514_v57  ;;  %v1546_v56 = vpack.c.bf16 %v814_v55, %v813_v54  ;;  %v1006_v13 = vsub.s32 1, %v2040_v2 }
  0xaa   :  { %1392 = vmatmul.mubr.msk.f32.vlgmr.msra.gmra.mrb[0].mxu0 %vm249_vm3, %v140_v17 }
  0xab   :  { %1398 = vmatpush3.msk.msra.mxu0 %vm262_vm0, %v452_v30  ;;  %1394 = vmatprep.mubr.msk.f32.mxu0 %vm249_vm3, %v141_v20  ;;  %vm995_vm0 = vcmask 60416  }
  0xac   :  { %1517 = vmatpush3.bf16.msra.mxu1 %v1514_v57  ;;  %v815_v57 = vld [vmem:[#allocation9 + $0xb0] sm:$0xff] }
  0xad   :  { %1519 = vmatprep.subr.bf16.mxu1 %v1518_v60 }
  0xae   :  { %1395 = vmatmul.mubr.msk.f32.gmra.mrb[2].mxu0 %vm249_vm3, %v142_v11 }
  0xaf   :  { %1399 = vmatprep.mubr.msk.f32.mxu0 %vm249_vm3, %v242_v43 }
  0xb0   :  { %1521 = vmatpush3.bf16.msra.mxu1 %v1518_v60  ;;  %v1550_v60 = vpack.c.bf16 %v816_v58, %v815_v57 }
  0xb1   :  { %1523 = vmatprep.subr.bf16.mxu1 %v1522_v63 }
  0xb2   :  { %1400 = vmatmul.mubr.msk.f32.vlgmr.msra.gmra.mrb[0].mxu0 %vm249_vm3, %v243_v47  ;;  %v604_v47 = vld [vmem:[#allocation9 + $0x78] sm:$0xff] }
  0xb3   :  { %1402 = vmatprep.mubr.msk.f32.mxu0 %vm249_vm3, %v244_v48  ;;  %v1534_v22 = vpack.c.bf16 %v604_v47, %v603_v18  ;;  %v809_v48 = vld [vmem:[#allocation9 + $0x80] sm:$0xff]  ;;  %v1014_v47 = vsub.s32 3, %v2040_v2 }
  0xb6   :  { %1403 = vmatmul.mubr.msk.f32.gmra.mrb[2].mxu0 %vm249_vm3, %v245_v51  ;;  %v1538_v51 = vpack.c.bf16 %v810_v50, %v809_v48 }
 0x185   :  { %v1401_v3 = vpop.f32.mrb[0].mxu0 }
 0x186   :  { %v565_v4 = vadd.f32 %v1401_v3, %v1296_v0  ;;  %v534_v5 = vpop.f32.mrb[1].mxu0 }
 0x187   :  { %v564_v6 = vadd.f32 %v1296_v0, %v534_v5 }
 0x188   :  { %v569_v7 = vmax.f32 %v565_v4, 0.0 }
 0x189   :  { %v568_v8 = vmax.f32 %v564_v6, 0.0  ;;  %v1404_v9 = vpop.f32.mrb[2].mxu0  ;;  %v1310_v6 = vld [vmem:[#allocation12] ss:$0 sm:$0xff] }
 0x18a   :  { %v573_v10 = vrot.slane %v569_v7, 7  ;;  %v585_v11 = vrot.slane %v569_v7, 1  ;;  %v567_v12 = vadd.f32 %v1404_v9, %v1296_v0  ;;  %v544_v14 = vpop.f32.mrb[3].mxu0 }
 0x18b   :  { %v572_v15 = vrot.slane %v568_v8, 7  ;;  %v584_v16 = vrot.slane %v568_v8, 1  ;;  %v566_v17 = vadd.f32 %v1296_v0, %v544_v14  ;;  %v1309_v0 = vld [vmem:[#allocation11] ss:$0 sm:$0xff] }
 0x18c   :  { %v571_v19 = vmax.f32 %v567_v12, 0.0 }
 0x18d   :  { %v570_v20 = vmax.f32 %v566_v17, 0.0  ;;  %v578_v21 = vsel %vm208_vm1, %v572_v15, %v573_v10  ;;  %v590_v25 = vsel %vm229_vm7, %v584_v16, %v585_v11 }
 0x18e   :  { %v575_v27 = vrot.slane %v571_v19, 7  ;;  %v587_v28 = vrot.slane %v571_v19, 1  ;;  %v581_v38 = vsel %vm2056_vm4, 0.0, %v578_v21  ;;  %v592_v59 = vsel %vm2093_vm8, 0.0, %v590_v25 }
 0x18f   :  { %v574_v29 = vrot.slane %v570_v20, 7  ;;  %v586_v30 = vrot.slane %v570_v20, 1  ;;  %v974_v25 = vsub.s32 %v971_v23, %v2040_v2 }
 0x190   :  { %v579_v31 = vsel %vm208_vm1, %v575_v27, %v572_v15  ;;  %v591_v33 = vsel %vm229_vm7, %v587_v28, %v584_v16 }
 0x191   :  { %v580_v34 = vsel %vm2051_vm2, 0.0, %v579_v31  ;;  %v577_v35 = vsel %vm208_vm1, %v573_v10, %v574_v29  ;;  %v576_v36 = vsel %vm208_vm1, %v574_v29, %v575_v27  ;;  %v589_v37 = vsel %vm229_vm7, %v585_v11, %v586_v30 }
 0x192   :  { %1421 = vmatprep.mubr.msk.f32.mxu1 %vm613_vm12, %v580_v34  ;;  %v582_v40 = vsel %vm2063_vm5, 0.0, %v577_v35  ;;  %v588_v43 = vsel %vm229_vm7, %v586_v30, %v587_v28  ;;  %v583_v46 = vsel %vm2071_vm6, 0.0, %v576_v36  ;;  %v593_v61 = vsel %vm2102_vm9, 0.0, %v589_v37 }
 0x193   :  { %1422 = vmatmul.mubr.msk.f32.vlgmr.msra.gmra.mrb[0].mxu1 %vm613_vm12, %v581_v38  ;;  %v594_v62 = vsel %vm2110_vm10, 0.0, %v588_v43  ;;  %v595_v39 = vsel %vm2122_vm11, 0.0, %v591_v33  ;;  %v1010_v43 = vsub.s32 2, %v2040_v2  ;;  %vm1872_vm1 = vmmov 0  }
 0x194   :  { %1525 = vmatpush3.bf16.msra.mxu1 %v1522_v63  ;;  %1424 = vmatprep.mubr.msk.f32.mxu1 %vm613_vm12, %v582_v40  ;;  %v1870_v63 = vmov 0  }
 0x195   :  { %1527 = vmatprep.subr.bf16.mxu1 %v1526_v32  ;;  %1612 = vset.pattern.permute.xlu0 %v1870_v63 }
 0x196   :  { %1613 = vset.pattern.permute.xlu1 %v1870_v63 }
 0x197   :  { %1425 = vmatmul.mubr.msk.f32.gmra.mrb[2].mxu1 %vm613_vm12, %v583_v46 }
 0x198   :  { %1529 = vmatpush3.bf16.msra.mxu1 %v1526_v32  ;;  %1443 = vmatprep.mubr.msk.f32.mxu1 %vm613_vm12, %v568_v8 }
 0x199   :  { %1531 = vmatprep.subr.bf16.mxu1 %v1530_v44 }
 0x19c   :  { %1533 = vmatpush3.bf16.msra.mxu1 %v1530_v44 }
 0x19d   :  { %1535 = vmatprep.subr.bf16.mxu1 %v1534_v22 }
 0x1a0   :  { %1537 = vmatpush3.bf16.msra.mxu1 %v1534_v22 }
 0x1a1   :  { %1539 = vmatprep.subr.bf16.mxu1 %v1538_v51 }
 0x1a3   :  { %1444 = vmatmul.mubr.msk.f32.vlgmr.msra.gmra.mrb[0].mxu1 %vm613_vm12, %v569_v7 }
 0x1a4   :  { %1446 = vmatprep.mubr.msk.f32.mxu1 %vm613_vm12, %v570_v20  ;;  %1541 = vmatpush3.bf16.msra.mxu1 %v1538_v51 }
 0x1a5   :  { %1543 = vmatprep.subr.bf16.mxu1 %v1542_v26 }
 0x1a7   :  { %1447 = vmatmul.mubr.msk.f32.gmra.mrb[2].mxu1 %vm613_vm12, %v571_v19  ;;  %v1311_v19 = vld [vmem:[#allocation2] ss:$0 sm:$0xff] }
 0x1a8   :  { %1545 = vmatpush3.bf16.msra.mxu1 %v1542_v26  ;;  %1465 = vmatprep.mubr.msk.f32.mxu1 %vm613_vm12, %v592_v59 }
 0x1a9   :  { %1547 = vmatprep.subr.bf16.mxu1 %v1546_v56 }
 0x1ac   :  { %1549 = vmatpush3.bf16.msra.mxu1 %v1546_v56 }
 0x1ad   :  { %1551 = vmatprep.subr.bf16.mxu1 %v1550_v60 }
 0x1b0   :  { %1553 = vmatpush3.bf16.msra.mxu1 %v1550_v60 }
 0x1b3   :  { %1466 = vmatmul.mubr.msk.f32.vlgmr.msra.gmra.mrb[0].mxu1 %vm613_vm12, %v593_v61 }
 0x1b4   :  { %1468 = vmatprep.mubr.msk.f32.mxu1 %vm613_vm12, %v594_v62 }
 0x1b7   :  { %1469 = vmatmul.mubr.msk.f32.gmra.mrb[2].mxu1 %vm613_vm12, %v595_v39 }
 0x286   :  { %v1467_v3 = vpop.f32.mrb[0].mxu1 }
 0x287   :  { %v2177_v4 = vadd.f32 %v1467_v3, %v1309_v0  ;;  %v895_v42 = vpop.f32.mrb[1].mxu1 }
 0x288   :  { %v2179_v5 = vadd.f32 %v1309_v0, %v895_v42 }
 0x289   :  { %v930_v45 = vmax.f32 %v2177_v4, 0.0 }
 0x28a   :  { %v1470_v7 = vpop.f32.mrb[2].mxu1  ;;  %v929_v8 = vmax.f32 %v2179_v5, 0.0 }
 0x28b   :  { %v905_v49 = vpop.f32.mrb[3].mxu1  ;;  %v941_v9 = vmul.f32 %v1310_v6, %v930_v45  ;;  %v2185_v10 = vadd.f32 %v1470_v7, %v1309_v0 }
 0x28c   :  { %v2187_v11 = vadd.f32 %v1309_v0, %v905_v49  ;;  %v940_v14 = vmul.f32 %v1310_v6, %v929_v8 }
 0x28d   :  { %946 = vadd.xlane.f32.xlu0 %v941_v9  ;;  %v932_v15 = vmax.f32 %v2185_v10, 0.0 }
 0x28e   :  { %v931_v12 = vmax.f32 %v2187_v11, 0.0 }
 0x28f   :  { %v943_v17 = vmul.f32 %v1310_v6, %v932_v15 }
 0x290   :  { %v942_v16 = vmul.f32 %v1310_v6, %v931_v12 }
 0x291   :  { %944 = vadd.xlane.f32.xlu0 %v940_v14  ;;  %v1154_v14 = vld [vmem:[#allocation14] sm:$0xff] }
 0x292   :  { %948 = vadd.xlane.f32.xlu1 %v942_v16  ;;  %v1155_v16 = vld [vmem:[#allocation14 + $0x8] sm:$0xff] }
 0x296   :  { %950 = vadd.xlane.f32.xlu1 %v943_v17  ;;  %v1871_v17 = vmov 0.0|0.0  }
 0x297   :  { %1554 = vmatprep.subr.bf16.mxu0 %v1871_v17 }
 0x2a7   :  { %959 = vperm.xlu0 %1612, %v1311_v19   ;;  %v1555_v19 = vpack.c.bf16 %v1155_v16, %v1154_v14 }
 0x2a9   :  { %1556 = vmatpush3.bf16.msra.mxu0 %v1555_v19 }
 0x2aa   :  { %1557 = vmatprep.subr.bf16.mxu0 %v1871_v17 }
 0x31a   :  { %v947_v20 = vpop.xlane.xlu0 %946 }
 0x31e   :  { %v945_v24 = vpop.xlane.xlu0 %944 }
 0x31f   :  { %v949_v21 = vpop.xlane.xlu1 %948 }
 0x323   :  { %v951_v27 = vpop.xlane.xlu1 %950 }
 0x326   :  { %v960_v28 = vpop.permute.xlu0 %959 }
 0x327   :  { %v962_v29 = vadd.f32 %v960_v28, %v945_v24  ;;  %v963_v30 = vadd.f32 %v960_v28, %v947_v20  ;;  %v964_v31 = vadd.f32 %v960_v28, %v949_v21  ;;  %v965_v32 = vadd.f32 %v960_v28, %v951_v27  ;;  %v1156_v27 = vld [vmem:[#allocation14 + $0x10] sm:$0xff]  ;;  %v1157_v28 = vld [vmem:[#allocation14 + $0x18] sm:$0xff] }
 0x329   :  { %v975_v33 = vrot.slane %v962_v29, %v974_v25  ;;  %v979_v34 = vrot.slane %v963_v30, %v974_v25  ;;  %v983_v35 = vrot.slane %v964_v31, %v974_v25  ;;  %v987_v36 = vrot.slane %v965_v32, %v974_v25 }
 0x32b   :  { %v989_v37 = vsel %vm988_vm13, %v979_v34, %v975_v33  ;;  %v1159_v33 = vld [vmem:[#allocation14 + $0x28] sm:$0xff] }
 0x32c   :  { %v991_v1 = vsel %vm990_vm14, %v983_v35, %v989_v37  ;;  %v1160_v37 = vld [vmem:[#allocation14 + $0x30] sm:$0xff] }
 0x32d   :  { %v993_v38 = vsel %vm992_vm15, %v987_v36, %v991_v1  ;;  %v1161_v1 = vld [vmem:[#allocation14 + $0x38] sm:$0xff] }
 0x32e   :  { %v996_v40 = vsel %vm995_vm0, %v993_v38, -inf  ;;  %v1564_v38 = vpack.c.bf16 %v1161_v1, %v1160_v37 }
 0x32f   :  { %997 = vmax.xlane.f32.xlu1 %v996_v40 }
 0x3bc   :  { %v998_v44 = vpop.xlane.xlu1 %997 }
 0x3bd   :  { %v1003_v46 = vrot.slane %v998_v44, %v1002_v41  ;;  %v1007_v18 = vrot.slane %v998_v44, %v1006_v13  ;;  %v1011_v22 = vrot.slane %v998_v44, %v1010_v43  ;;  %v1015_v52 = vrot.slane %v998_v44, %v1014_v47  ;;  %v1164_v44 = vld [vmem:[#allocation14 + $0x50] sm:$0xff] }
 0x3bf   :  { %v1020_v48 = vsub.f32 %v962_v29, %v1003_v46  ;;  %v1021_v50 = vsub.f32 %v963_v30, %v1007_v18  ;;  %v1022_v53 = vsub.f32 %v964_v31, %v1011_v22  ;;  %v1023_v54 = vsub.f32 %v965_v32, %v1015_v52  ;;  %v1158_v32 = vld [vmem:[#allocation14 + $0x20] sm:$0xff]  ;;  %v1165_v46 = vld [vmem:[#allocation14 + $0x58] sm:$0xff]  ;;  %v1167_v22 = vld [vmem:[#allocation14 + $0x68] sm:$0xff] }
 0x3c0   :  { %v1558_v29 = vpack.c.bf16 %v1157_v28, %v1156_v27  ;;  %v1561_v34 = vpack.c.bf16 %v1159_v33, %v1158_v32  ;;  %v1570_v18 = vpack.c.bf16 %v1165_v46, %v1164_v44 }
 0x3c1   :  { %v1024_v51 = vmul.f32 1.442695, %v1020_v48  ;;  %v1026_v26 = vmul.f32 1.442695, %v1021_v50  ;;  %v1028_v55 = vmul.f32 1.442695, %v1022_v53 }
 0x3c2   :  { %v1030_v56 = vmul.f32 1.442695, %v1023_v54  ;;  %1559 = vmatpush3.bf16.msra.mxu0 %v1558_v29  ;;  %v1168_v50 = vld [vmem:[#allocation14 + $0x70] sm:$0xff]  ;;  %v1873_v53 = vmov 0.0  }
 0x3c3   :  { %1614 = vpow2.f32 %v1024_v51  ;;  %1560 = vmatprep.subr.bf16.mxu0 %v1871_v17  ;;  %v1169_v51 = vld [vmem:[#allocation14 + $0x78] sm:$0xff]  ;;  %1503 = vmatprep.mubr.msk.f32.mxu0 %vm1872_vm1, %v1873_v53 }
 0x3c4   :  { %1616 = vpow2.f32 %v1026_v26  ;;  %v1576_v52 = vpack.c.bf16 %v1169_v51, %v1168_v50 }
 0x3c5   :  { %1618 = vpow2.f32 %v1028_v55 }
 0x3c6   :  { %1620 = vpow2.f32 %v1030_v56  ;;  %1562 = vmatpush3.bf16.msra.mxu0 %v1561_v34 }
 0x3c7   :  { %1563 = vmatprep.subr.bf16.mxu0 %v1871_v17 }
 0x3ca   :  { %1565 = vmatpush3.bf16.msra.mxu0 %v1564_v38 }
 0x3cb   :  { %1566 = vmatprep.subr.bf16.mxu0 %v1871_v17 }
 0x3cd   :  { %v1615_v57 = vpop.eup %1614 }
 0x3ce   :  { %1037 = vperm.xlu1 %1613, %v1615_v57   ;;  %v1617_v58 = vpop.eup %1616 }
 0x3cf   :  { %v1619_v59 = vpop.eup %1618 }
 0x3d0   :  { %v1621_v2 = vpop.eup %1620 }
 0x3d2   :  { %1040 = vperm.xlu1 %1613, %v1617_v58  }
 0x3d6   :  { %1043 = vperm.xlu1 %1613, %v1619_v59  }
 0x3da   :  { %1046 = vperm.xlu1 %1613, %v1621_v2  }
 0x44d   :  { %v1038_v60 = vpop.permute.xlu1 %1037 }
 0x44e   :  { %v1051_v0 = vrot.slane %v1038_v60, %v974_v25 }
 0x451   :  { %v1041_v61 = vpop.permute.xlu1 %1040 }
 0x452   :  { %v1055_v39 = vrot.slane %v1041_v61, %v974_v25 }
 0x454   :  { %v1064_v42 = vsel %vm988_vm13, %v1055_v39, %v1051_v0 }
 0x455   :  { %v1044_v62 = vpop.permute.xlu1 %1043 }
 0x456   :  { %v1059_v63 = vrot.slane %v1044_v62, %v974_v25 }
 0x458   :  { %v1065_v7 = vsel %vm990_vm14, %v1059_v63, %v1064_v42 }
 0x459   :  { %v1047_v3 = vpop.permute.xlu1 %1046 }
 0x45a   :  { %v1063_v6 = vrot.slane %v1047_v3, %v974_v25 }
 0x45c   :  { %v1066_v49 = vsel %vm992_vm15, %v1063_v6, %v1065_v7 }
 0x45d   :  { %v1068_v9 = vsel %vm995_vm0, %v1066_v49, 0.0 }
 0x45e   :  { %1069 = vadd.xlane.f32.xlu1 %v1068_v9 }
 0x4eb   :  { %v1070_v20 = vpop.xlane.xlu1 %1069 }
 0x4ec   :  { %1622 = vrcp.f32 %v1070_v20 }
 0x4f6   :  { %v1623_v21 = vpop.eup %1622 }
 0x4f7   :  { %v1076_v23 = vrot.slane %v1623_v21, %v1002_v41  ;;  %v1080_v25 = vrot.slane %v1623_v21, %v1006_v13  ;;  %v1084_v31 = vrot.slane %v1623_v21, %v1010_v43  ;;  %v1088_v36 = vrot.slane %v1623_v21, %v1014_v47  ;;  %v1162_v41 = vld [vmem:[#allocation14 + $0x40] sm:$0xff]  ;;  %v1163_v13 = vld [vmem:[#allocation14 + $0x48] sm:$0xff] }
 0x4f8   :  { %v1567_v43 = vpack.c.bf16 %v1163_v13, %v1162_v41  ;;  %v1166_v47 = vld [vmem:[#allocation14 + $0x60] sm:$0xff] }
 0x4f9   :  { %v1093_v24 = vmul.f32 %v1615_v57, %v1076_v23  ;;  %v1094_v30 = vmul.f32 %v1617_v58, %v1080_v25  ;;  %v1095_v35 = vmul.f32 %v1619_v59, %v1084_v31  ;;  %v1096_v40 = vmul.f32 %v1621_v2, %v1088_v36 }
 0x4fa   :  { %1568 = vmatpush3.bf16.msra.mxu0 %v1567_v43  ;;  %v1573_v48 = vpack.c.bf16 %v1167_v22, %v1166_v47 }
 0x4fb   :  { %1099 = vperm.xlu0 %1612, %v1093_v24   ;;  %1569 = vmatprep.subr.bf16.mxu0 %v1871_v17 }
 0x4fe   :  { %1571 = vmatpush3.bf16.msra.mxu0 %v1570_v18 }
 0x4ff   :  { %1104 = vperm.xlu0 %1612, %v1094_v30   ;;  %1572 = vmatprep.subr.bf16.mxu0 %v1871_v17 }
 0x502   :  { %1574 = vmatpush3.bf16.msra.mxu0 %v1573_v48 }
 0x503   :  { %1109 = vperm.xlu0 %1612, %v1095_v35   ;;  %1575 = vmatprep.subr.bf16.mxu0 %v1871_v17 }
 0x506   :  { %1577 = vmatpush3.bf16.msra.mxu0 %v1576_v52 }
 0x507   :  { %1114 = vperm.xlu0 %1612, %v1096_v40  }
 0x57a   :  { %v1100_v26 = vpop.permute.xlu0 %1099 }
 0x57b   :  { %v1117_v54 = vmul.f32 %v1100_v26, %v929_v8 }
 0x57d   :  { %v1121_v55 = vrot.slane %v1117_v54, 4 }
 0x57e   :  { %v1105_v56 = vpop.permute.xlu0 %1104 }
 0x57f   :  { %v1118_v57 = vmul.f32 %v1105_v56, %v930_v45  ;;  %v1122_v58 = vadd.f32 %v1121_v55, %v1117_v54 }
 0x581   :  { %v1127_v59 = vrot.slane %v1118_v57, 4  ;;  %v1123_v62 = vrot.slane %v1122_v58, 2 }
 0x582   :  { %v1110_v2 = vpop.permute.xlu0 %1109 }
 0x583   :  { %v1128_v60 = vadd.f32 %v1127_v59, %v1118_v57  ;;  %v1119_v61 = vmul.f32 %v1110_v2, %v931_v12  ;;  %v1124_v8 = vadd.f32 %v1123_v62, %v1122_v58 }
 0x585   :  { %v1129_v39 = vrot.slane %v1128_v60, 2  ;;  %v1133_v63 = vrot.slane %v1119_v61, 4  ;;  %v1125_v9 = vrot.slane %v1124_v8, 1 }
 0x586   :  { %v1115_v0 = vpop.permute.xlu0 %1114 }
 0x587   :  { %v1130_v3 = vadd.f32 %v1129_v39, %v1128_v60  ;;  %v1134_v42 = vadd.f32 %v1133_v63, %v1119_v61  ;;  %v1120_v5 = vmul.f32 %v1115_v0, %v932_v15  ;;  %v1126_v19 = vadd.f32 %v1125_v9, %v1124_v8 }
 0x589   :  { %v1135_v6 = vrot.slane %v1134_v42, 2  ;;  %v1139_v4 = vrot.slane %v1120_v5, 4  ;;  %v1131_v45 = vrot.slane %v1130_v3, 1 }
 0x58b   :  { %v1136_v7 = vadd.f32 %v1135_v6, %v1134_v42  ;;  %v1140_v49 = vadd.f32 %v1139_v4, %v1120_v5  ;;  %v1132_v11 = vadd.f32 %v1131_v45, %v1130_v3 }
 0x58d   :  { %v1137_v14 = vrot.slane %v1136_v7, 1  ;;  %v1141_v16 = vrot.slane %v1140_v49, 2  ;;  %v1149_v23 = vsel %vm988_vm13, %v1132_v11, %v1126_v19 }
 0x58f   :  { %v1142_v12 = vadd.f32 %v1141_v16, %v1140_v49  ;;  %v1138_v17 = vadd.f32 %v1137_v14, %v1136_v7 }
 0x591   :  { %v1143_v20 = vrot.slane %v1142_v12, 1  ;;  %v1150_v10 = vsel %vm990_vm14, %v1138_v17, %v1149_v23 }
 0x593   :  { %v1144_v21 = vadd.f32 %v1143_v20, %v1142_v12 }
 0x595   :  { %v1151_v15 = vsel %vm992_vm15, %v1144_v21, %v1150_v10 }
 0x596   :  { %1504 = vmatmul.mubr.f32.vlgmr.msra.gmra.mrb[4].mxu0 %v1151_v15  ;;  %1153 = vst [vmem:[#allocation18] sm:$0xf] %v1151_v15 }
 0x597   :  { %1811 = shalt.err (!%p1808_p12)
}
 0x598   :  { %s1812_s26 = scalar_lea.hbm %s2256_s10, 64 }
 0x599   :  { %p1813_p13 = scmp.ne.s32.totalorder %s2256_s10, %s1812_s26  ;;  %p1816_p0 = scmp.lt.u32.totalorder %s1812_s26, %s2256_s10 }
 0x59b   :  { %p1818_p1 = pnand %p1816_p0, %p1813_p13 }
 0x59d   :  { %1821 = shalt.err (!%p1818_p1)
}
 0x59e   :  { %1267 = dma.vmem_to_hbm [thread:$0]  %s1265_s1, 64, %s2256_s10, [#allocation19]   ;;  %v1312_v24 = vld [vmem:[#allocation15] ss:$0 sm:$0xff] }
 0x59f   :  { %s1875_s13 = smov [#allocation17]  }
 0x5a0   :  { %s1254_s0 = sshll.u32 %s1875_s13, 4  ;;  %s1255_s0 = int_to_ptr.vmem [resolvable:$true] %s1254_s0 }
 0x5a1   :  { %s1822_s4 = scalar_lea.vmem %s1255_s0, 64  ;;  %p1827_p3 = scmp.lt.s32.totalorder %s1255_s0, %s1255_s0 }
 0x5a2   :  { %p1823_p2 = scmp.ne.s32.totalorder %s1255_s0, %s1822_s4  ;;  %p1828_p4 = scmp.lt.s32.totalorder %s1822_s4, %s1822_s4 }
 0x5a4   :  { %p1829_p5 = por %p1828_p4, %p1827_p3 }
 0x5a6   :  { %p1830_p6 = pnand %p1829_p5, %p1823_p2 }
 0x669   :  { %v1243_v25 = vpop.f32.mrb[4].mxu0 }
 0x66a   :  { %v1244_v27 = vadd.f32 %v1312_v24, %v1243_v25  ;;  %v1505_v28 = vpop.f32.mrb[5].mxu0 }
 0x66c   :  { %1247 = vst [vmem:[#allocation17] sm:$0xf] %v1244_v27 }
 0x66d   :  { %1833 = shalt.err (!%p1830_p6)
}
 0x66e   :  { %s1834_s18 = scalar_lea.hbm %s2255_s9, 64 }
 0x66f   :  { %p1835_p7 = scmp.ne.s32.totalorder %s2255_s9, %s1834_s18  ;;  %p1838_p8 = scmp.lt.u32.totalorder %s1834_s18, %s2255_s9 }
 0x671   :  { %p1840_p9 = pnand %p1838_p8, %p1835_p7 }
 0x673   :  { %1843 = shalt.err (!%p1840_p9)
}
 0x674   :  { %1257 = dma.vmem_to_hbm [thread:$0]  %s1255_s0, 64, %s2255_s9, [#allocation5]  }
 0x675   :  { %1854 = dma.done.wait [#allocation5], 64  }
 0x676   :  { %1855 = vsyncadd [#allocation5], 4294967232 }
 0x677   :  { %1856 = dma.done.wait [#allocation19], 64  }
 0x678   :  { %1857 = vsyncadd [#allocation19], 4294967232 }
 0x679   :  { %1274 = vsyncpa [#allocation4], 1 }
 0x67a   :  { %1275 = vsyncpa [#allocation7], 1 }
 0x67b   :  { %1276 = vsyncpa [#allocation10], 1 }
 0x67c   :  { %1277 = vsyncpa [#allocation13], 1 }
 0x67d   :  { %1278 = vsyncpa [#allocation16], 1 }
 0x67e   :  { %1279 = vsyncpa [#allocation5], 1 }
 0x67f   :  { %1280 = vsyncpa [#allocation19], 1 }

</bundles_post_ra>
